<compile_context>
chip_gen: v6e
topology: v6e:2x2x1
jax: 0.10.0
libtpu: 0.0.40
codegen_flags: <defaults>
</compile_context>

<pallas_src>
import math
import functools

import jax
import jax.numpy as jnp
from jax.experimental import pallas as pl
from jax.experimental.pallas import tpu as pltpu


# ---------------------------------------------------------------------------
# In-kernel helpers
# ---------------------------------------------------------------------------
def _layernorm(x, w, b, eps=1e-12):
    # TF-style LayerNorm (epsilon inside the sqrt), biased variance, last axis.
    u = jnp.mean(x, axis=-1, keepdims=True)
    d = x - u
    s = jnp.mean(d * d, axis=-1, keepdims=True)
    return w * (d / jnp.sqrt(s + eps)) + b


# ---------------------------------------------------------------------------
# Pallas kernel: full SelfAttention block for one batch element
# ---------------------------------------------------------------------------
def self_attention_kernel(x_ref, mask_ref,
                          wqkv_ref, bqkv_ref, wo_ref, bo_ref, lnw_ref, lnb_ref,
                          out_ref, *, num_heads):
    x = x_ref[0]              # (S, H) f32
    mask = mask_ref[0, 0]     # (1, S) additive mask, broadcasts over heads & query pos

    S, H = x.shape
    nh = num_heads
    dh = H // nh
    scale = 1.0 / math.sqrt(dh)

    # --- fused QKV projection: bf16 MXU inputs, f32 accumulation ---
    x_bf = x.astype(jnp.bfloat16)
    qkv = jnp.dot(x_bf, wqkv_ref[...],
                  preferred_element_type=jnp.float32) + bqkv_ref[...]   # (S, 3H) f32

    q = qkv[:, 0:H] * scale          # fold 1/sqrt(dh) into q once
    k = qkv[:, H:2 * H]
    v = qkv[:, 2 * H:3 * H]

    def split_heads(t):              # (S, H) f32 -> (nh, S, dh) bf16
        return jnp.stack([t[:, h * dh:(h + 1) * dh] for h in range(nh)],
                         axis=0).astype(jnp.bfloat16)

    q3, k3, v3 = split_heads(q), split_heads(k), split_heads(v)

    # --- batched attention over all heads at once ---
    scores = jnp.einsum('hqd,hkd->hqk', q3, k3,
                        preferred_element_type=jnp.float32)             # (nh, S, S) f32
    scores = scores + mask                                              # (1,S) broadcast
    scores = scores - jnp.max(scores, axis=-1, keepdims=True)
    p = jnp.exp(scores)
    p = p * pl.reciprocal(jnp.sum(p, axis=-1, keepdims=True), approx=True)
    # TODO(synk): attn_dropout / out_dropout are eval-mode identities here.

    ctx = jnp.einsum('hqk,hkd->hqd', p.astype(jnp.bfloat16), v3,
                     preferred_element_type=jnp.float32)                # (nh, S, dh) f32

    # merge heads back to (S, H) (single relayout copy, no live per-head matmul results)
    ctx = jnp.concatenate([ctx[h] for h in range(nh)], axis=-1)

    # --- output dense + residual + LayerNorm ---
    attn = jnp.dot(ctx.astype(jnp.bfloat16), wo_ref[...],
                   preferred_element_type=jnp.float32) + bo_ref[...]
    out = _layernorm(attn + x, lnw_ref[...], lnb_ref[...])
    out_ref[0] = out.astype(out_ref.dtype)


# ---------------------------------------------------------------------------
# Python wrapper
# ---------------------------------------------------------------------------
def self_attention(x, attention_mask, params, num_heads):
    B, S, H = x.shape
    kernel = functools.partial(self_attention_kernel, num_heads=num_heads)

    def full_spec(p):
        nd = p.ndim
        return pl.BlockSpec(p.shape, lambda b, _nd=nd: (0,) * _nd)

    in_specs = [
        pl.BlockSpec((1, S, H), lambda b: (b, 0, 0)),        # hidden_states
        pl.BlockSpec((1, 1, 1, S), lambda b: (b, 0, 0, 0)),  # attention_mask
    ] + [full_spec(p) for p in params]

    # VMEM budget: double-buffered grid blocks + f32 in-kernel intermediates + headroom.
    param_bytes = sum(int(p.size) * p.dtype.itemsize for p in params)
    block_bytes = 2 * (2 * S * H * 4 + S * 4 + param_bytes)
    act_bytes = (10 * S * H + 3 * num_heads * S * S + 3 * S * 3 * H) * 4
    vmem_limit = int(min(max(block_bytes + act_bytes + (8 << 20), 16 << 20), 96 << 20))

    return pl.pallas_call(
        kernel,
        out_shape=jax.ShapeDtypeStruct((B, S, H), x.dtype),
        grid=(B,),
        in_specs=in_specs,
        out_specs=pl.BlockSpec((1, S, H), lambda b: (b, 0, 0)),
        compiler_params=pltpu.CompilerParams(
            dimension_semantics=("parallel",),   # independent batch elems -> both v7x TCs
            vmem_limit_bytes=vmem_limit,
        ),
    )(x, attention_mask, *params)


# ---------------------------------------------------------------------------
# Parameter construction (raw f32 for reference, packed bf16 for the kernel)
# ---------------------------------------------------------------------------
def init_raw_params(key, hidden_size):
    H = hidden_size
    ks = jax.random.split(key, 8)
    std = 0.02

    def nrm(k, shape):
        return jax.random.normal(k, shape, jnp.float32) * std

    return dict(
        wq=nrm(ks[0], (H, H)), wk=nrm(ks[1], (H, H)), wv=nrm(ks[2], (H, H)),
        wo=nrm(ks[3], (H, H)),
        bq=nrm(ks[4], (H,)), bk=nrm(ks[5], (H,)), bv=nrm(ks[6], (H,)),
        bo=nrm(ks[7], (H,)),
        lnw=jnp.ones((H,), jnp.float32), lnb=jnp.zeros((H,), jnp.float32),
    )


def pack_params(raw):
    wqkv = jnp.concatenate([raw["wq"], raw["wk"], raw["wv"]], axis=1).astype(jnp.bfloat16)
    bqkv = jnp.concatenate([raw["bq"], raw["bk"], raw["bv"]])[None, :]      # (1, 3H) f32
    return (wqkv, bqkv,
            raw["wo"].astype(jnp.bfloat16), raw["bo"][None, :],
            raw["lnw"][None, :], raw["lnb"][None, :])


# ---------------------------------------------------------------------------
# Pure-JAX f32 reference (matches the PyTorch module semantics)
# ---------------------------------------------------------------------------
def self_attention_reference(x, attention_mask, raw, num_heads):
    B, S, H = x.shape
    nh, dh = num_heads, H // num_heads
    q = x @ raw["wq"] + raw["bq"]
    k = x @ raw["wk"] + raw["bk"]
    v = x @ raw["wv"] + raw["bv"]

    def split(t):
        return t.reshape(B, S, nh, dh).transpose(0, 2, 1, 3)

    q, k, v = split(q), split(k), split(v)
    sc = jnp.einsum("bhqd,bhkd->bhqk", q, k) / math.sqrt(dh) + attention_mask
    p = jax.nn.softmax(sc, axis=-1)
    ctx = jnp.einsum("bhqk,bhkd->bhqd", p, v).transpose(0, 2, 1, 3).reshape(B, S, H)
    h = ctx @ raw["wo"] + raw["bo"]
    h = h + x
    u = h.mean(-1, keepdims=True)
    s = ((h - u) ** 2).mean(-1, keepdims=True)
    return raw["lnw"] * ((h - u) / jnp.sqrt(s + 1e-12)) + raw["lnb"]


if __name__ == "__main__":
    B, S, H = 2, 8, 32
    num_heads = 4

    key = jax.random.PRNGKey(0)
    k_x, k_p = jax.random.split(key)

    hidden_states = jax.random.normal(k_x, (B, S, H), jnp.float32)

    # BERT-style additive mask: sequence 0 full length, sequence 1 has 5 valid tokens.
    pad = jnp.array([[1] * S, [1] * 5 + [0] * (S - 5)], jnp.float32)   # (B, S)
    attention_mask = (1.0 - pad)[:, None, None, :] * -10000.0          # (B, 1, 1, S)

    raw = init_raw_params(k_p, H)
    params = pack_params(raw)

    out = self_attention(hidden_states, attention_mask, params, num_heads)
    out = jax.block_until_ready(out)

    assert out.shape == (B, S, H)

    ref = self_attention_reference(hidden_states, attention_mask, raw, num_heads)
    err = float(jnp.max(jnp.abs(out - ref)))
    assert err < 3e-2, f"max abs err vs f32 reference: {err}"

    print("KERNEL_OK")
</pallas_src>

<mosaic_0001>
module attributes {stable_mosaic.version = 11 : i64} {
  func.func @self_attention_kernel(%arg0: i32, %arg1: memref<1x8x32xf32, #tpu.memory_space<vmem>>, %arg2: memref<1x1x1x8xf32, #tpu.memory_space<vmem>>, %arg3: memref<32x96xbf16, #tpu.memory_space<vmem>>, %arg4: memref<1x96xf32, #tpu.memory_space<vmem>>, %arg5: memref<32x32xbf16, #tpu.memory_space<vmem>>, %arg6: memref<1x32xf32, #tpu.memory_space<vmem>>, %arg7: memref<1x32xf32, #tpu.memory_space<vmem>>, %arg8: memref<1x32xf32, #tpu.memory_space<vmem>>, %arg9: memref<1x8x32xf32, #tpu.memory_space<vmem>>) attributes {dimension_semantics = [#tpu.dimension_semantics<parallel>], iteration_bounds = array<i64: 2>, scalar_prefetch = 0 : i64, scratch_operands = 0 : i64, tpu.core_type = #tpu.core_type<tc>, window_params = [{transform_indices = @transform_0, window_bounds = array<i64: 1, 8, 32>}, {transform_indices = @transform_1, window_bounds = array<i64: 1, 1, 1, 8>}, {pipeline_mode = #tpu.pipeline_mode<synchronous>, transform_indices = @transform_2, window_bounds = array<i64: 32, 96>}, {pipeline_mode = #tpu.pipeline_mode<synchronous>, transform_indices = @transform_3, window_bounds = array<i64: 1, 96>}, {pipeline_mode = #tpu.pipeline_mode<synchronous>, transform_indices = @transform_4, window_bounds = array<i64: 32, 32>}, {pipeline_mode = #tpu.pipeline_mode<synchronous>, transform_indices = @transform_5, window_bounds = array<i64: 1, 32>}, {pipeline_mode = #tpu.pipeline_mode<synchronous>, transform_indices = @transform_6, window_bounds = array<i64: 1, 32>}, {pipeline_mode = #tpu.pipeline_mode<synchronous>, transform_indices = @transform_7, window_bounds = array<i64: 1, 32>}, {transform_indices = @transform_8, window_bounds = array<i64: 1, 8, 32>}]} {
    %c0 = arith.constant 0 : index
    %c0_0 = arith.constant 0 : index
    %c0_1 = arith.constant 0 : index
    %0 = vector.load %arg1[%c0, %c0_0, %c0_1] : memref<1x8x32xf32, #tpu.memory_space<vmem>>, vector<1x8x32xf32>
    %1 = vector.shape_cast %0 : vector<1x8x32xf32> to vector<8x32xf32>
    %c0_2 = arith.constant 0 : index
    %c0_3 = arith.constant 0 : index
    %c0_4 = arith.constant 0 : index
    %c0_5 = arith.constant 0 : index
    %2 = vector.load %arg2[%c0_2, %c0_3, %c0_4, %c0_5] : memref<1x1x1x8xf32, #tpu.memory_space<vmem>>, vector<1x1x1x8xf32>
    %3 = vector.shape_cast %2 : vector<1x1x1x8xf32> to vector<1x8xf32>
    %4 = arith.truncf %1 : vector<8x32xf32> to vector<8x32xbf16>
    %c0_6 = arith.constant 0 : index
    %c0_7 = arith.constant 0 : index
    %5 = vector.load %arg3[%c0_6, %c0_7] : memref<32x96xbf16, #tpu.memory_space<vmem>>, vector<32x96xbf16>
    %cst = arith.constant dense<0.000000e+00> : vector<8x96xf32>
    %6 = tpu.matmul %4, %5, %cst {dimension_numbers = #tpu.dot_dimension_numbers<[1], [0], [0], [1], [0, 0, 1, 1], [], []>} : vector<8x32xbf16>, vector<32x96xbf16>, vector<8x96xf32> -> vector<8x96xf32>
    %c0_8 = arith.constant 0 : index
    %c0_9 = arith.constant 0 : index
    %7 = vector.load %arg4[%c0_8, %c0_9] : memref<1x96xf32, #tpu.memory_space<vmem>>, vector<1x96xf32>
    %8 = vector.broadcast %7 : vector<1x96xf32> to vector<8x96xf32>
    %9 = arith.addf %6, %8 : vector<8x96xf32>
    %10 = vector.extract_strided_slice %9 {offsets = [0, 0], sizes = [8, 32], strides = [1, 1]} : vector<8x96xf32> to vector<8x32xf32>
    %cst_10 = arith.constant 0.353553385 : f32
    %11 = vector.broadcast %cst_10 : f32 to vector<8x32xf32>
    %12 = arith.mulf %10, %11 : vector<8x32xf32>
    %13 = vector.extract_strided_slice %9 {offsets = [0, 32], sizes = [8, 32], strides = [1, 1]} : vector<8x96xf32> to vector<8x32xf32>
    %14 = vector.extract_strided_slice %9 {offsets = [0, 64], sizes = [8, 32], strides = [1, 1]} : vector<8x96xf32> to vector<8x32xf32>
    %15 = vector.extract_strided_slice %12 {offsets = [0, 0], sizes = [8, 8], strides = [1, 1]} : vector<8x32xf32> to vector<8x8xf32>
    %16 = vector.extract_strided_slice %12 {offsets = [0, 8], sizes = [8, 8], strides = [1, 1]} : vector<8x32xf32> to vector<8x8xf32>
    %17 = vector.extract_strided_slice %12 {offsets = [0, 16], sizes = [8, 8], strides = [1, 1]} : vector<8x32xf32> to vector<8x8xf32>
    %18 = vector.extract_strided_slice %12 {offsets = [0, 24], sizes = [8, 8], strides = [1, 1]} : vector<8x32xf32> to vector<8x8xf32>
    %19 = vector.shape_cast %15 : vector<8x8xf32> to vector<1x8x8xf32>
    %20 = vector.shape_cast %16 : vector<8x8xf32> to vector<1x8x8xf32>
    %21 = vector.shape_cast %17 : vector<8x8xf32> to vector<1x8x8xf32>
    %22 = vector.shape_cast %18 : vector<8x8xf32> to vector<1x8x8xf32>
    %23 = tpu.concatenate %19, %20, %21, %22 in 0 : vector<1x8x8xf32>, vector<1x8x8xf32>, vector<1x8x8xf32>, vector<1x8x8xf32> -> vector<4x8x8xf32>
    %24 = arith.truncf %23 : vector<4x8x8xf32> to vector<4x8x8xbf16>
    %25 = vector.extract_strided_slice %13 {offsets = [0, 0], sizes = [8, 8], strides = [1, 1]} : vector<8x32xf32> to vector<8x8xf32>
    %26 = vector.extract_strided_slice %13 {offsets = [0, 8], sizes = [8, 8], strides = [1, 1]} : vector<8x32xf32> to vector<8x8xf32>
    %27 = vector.extract_strided_slice %13 {offsets = [0, 16], sizes = [8, 8], strides = [1, 1]} : vector<8x32xf32> to vector<8x8xf32>
    %28 = vector.extract_strided_slice %13 {offsets = [0, 24], sizes = [8, 8], strides = [1, 1]} : vector<8x32xf32> to vector<8x8xf32>
    %29 = vector.shape_cast %25 : vector<8x8xf32> to vector<1x8x8xf32>
    %30 = vector.shape_cast %26 : vector<8x8xf32> to vector<1x8x8xf32>
    %31 = vector.shape_cast %27 : vector<8x8xf32> to vector<1x8x8xf32>
    %32 = vector.shape_cast %28 : vector<8x8xf32> to vector<1x8x8xf32>
    %33 = tpu.concatenate %29, %30, %31, %32 in 0 : vector<1x8x8xf32>, vector<1x8x8xf32>, vector<1x8x8xf32>, vector<1x8x8xf32> -> vector<4x8x8xf32>
    %34 = arith.truncf %33 : vector<4x8x8xf32> to vector<4x8x8xbf16>
    %35 = vector.extract_strided_slice %14 {offsets = [0, 0], sizes = [8, 8], strides = [1, 1]} : vector<8x32xf32> to vector<8x8xf32>
    %36 = vector.extract_strided_slice %14 {offsets = [0, 8], sizes = [8, 8], strides = [1, 1]} : vector<8x32xf32> to vector<8x8xf32>
    %37 = vector.extract_strided_slice %14 {offsets = [0, 16], sizes = [8, 8], strides = [1, 1]} : vector<8x32xf32> to vector<8x8xf32>
    %38 = vector.extract_strided_slice %14 {offsets = [0, 24], sizes = [8, 8], strides = [1, 1]} : vector<8x32xf32> to vector<8x8xf32>
    %39 = vector.shape_cast %35 : vector<8x8xf32> to vector<1x8x8xf32>
    %40 = vector.shape_cast %36 : vector<8x8xf32> to vector<1x8x8xf32>
    %41 = vector.shape_cast %37 : vector<8x8xf32> to vector<1x8x8xf32>
    %42 = vector.shape_cast %38 : vector<8x8xf32> to vector<1x8x8xf32>
    %43 = tpu.concatenate %39, %40, %41, %42 in 0 : vector<1x8x8xf32>, vector<1x8x8xf32>, vector<1x8x8xf32>, vector<1x8x8xf32> -> vector<4x8x8xf32>
    %44 = arith.truncf %43 : vector<4x8x8xf32> to vector<4x8x8xbf16>
    "tpu.trace_start"() <{level = 10 : i32, message = "hqd,hkd->hqk"}> : () -> ()
    %cst_11 = arith.constant dense<0.000000e+00> : vector<4x8x8xf32>
    %45 = tpu.matmul %24, %34, %cst_11 {dimension_numbers = #tpu.dot_dimension_numbers<[2], [2], [1], [1], [0, 0, 0, 1, 1, 1], [0], [0]>} : vector<4x8x8xbf16>, vector<4x8x8xbf16>, vector<4x8x8xf32> -> vector<4x8x8xf32>
    "tpu.trace_stop"() : () -> ()
    %46 = vector.shape_cast %3 : vector<1x8xf32> to vector<1x1x8xf32>
    %47 = vector.broadcast %46 : vector<1x1x8xf32> to vector<4x8x8xf32>
    %48 = arith.addf %45, %47 : vector<4x8x8xf32>
    %cst_12 = arith.constant dense<0xFF800000> : vector<4x8xf32>
    %49 = vector.multi_reduction <maximumf>, %48, %cst_12 [2] : vector<4x8x8xf32> to vector<4x8xf32>
    %50 = vector.shape_cast %49 : vector<4x8xf32> to vector<4x8x1xf32>
    %51 = vector.broadcast %50 : vector<4x8x1xf32> to vector<4x8x8xf32>
    %52 = arith.subf %48, %51 : vector<4x8x8xf32>
    %53 = math.exp %52 : vector<4x8x8xf32>
    %cst_13 = arith.constant dense<0.000000e+00> : vector<4x8xf32>
    %54 = vector.multi_reduction <add>, %53, %cst_13 [2] : vector<4x8x8xf32> to vector<4x8xf32>
    %55 = vector.shape_cast %54 : vector<4x8xf32> to vector<4x8x1xf32>
    %56 = tpu.reciprocal %55 {approx = true} : vector<4x8x1xf32> -> vector<4x8x1xf32>
    %57 = vector.broadcast %56 : vector<4x8x1xf32> to vector<4x8x8xf32>
    %58 = arith.mulf %53, %57 : vector<4x8x8xf32>
    %59 = arith.truncf %58 : vector<4x8x8xf32> to vector<4x8x8xbf16>
    "tpu.trace_start"() <{level = 10 : i32, message = "hqk,hkd->hqd"}> : () -> ()
    %cst_14 = arith.constant dense<0.000000e+00> : vector<4x8x8xf32>
    %60 = tpu.matmul %59, %44, %cst_14 {dimension_numbers = #tpu.dot_dimension_numbers<[2], [1], [1], [2], [0, 0, 0, 1, 1, 2], [0], [0]>} : vector<4x8x8xbf16>, vector<4x8x8xbf16>, vector<4x8x8xf32> -> vector<4x8x8xf32>
    "tpu.trace_stop"() : () -> ()
    %61 = vector.extract_strided_slice %60 {offsets = [0, 0, 0], sizes = [1, 8, 8], strides = [1, 1, 1]} : vector<4x8x8xf32> to vector<1x8x8xf32>
    %62 = vector.shape_cast %61 : vector<1x8x8xf32> to vector<8x8xf32>
    %63 = vector.extract_strided_slice %60 {offsets = [1, 0, 0], sizes = [1, 8, 8], strides = [1, 1, 1]} : vector<4x8x8xf32> to vector<1x8x8xf32>
    %64 = vector.shape_cast %63 : vector<1x8x8xf32> to vector<8x8xf32>
    %65 = vector.extract_strided_slice %60 {offsets = [2, 0, 0], sizes = [1, 8, 8], strides = [1, 1, 1]} : vector<4x8x8xf32> to vector<1x8x8xf32>
    %66 = vector.shape_cast %65 : vector<1x8x8xf32> to vector<8x8xf32>
    %67 = vector.extract_strided_slice %60 {offsets = [3, 0, 0], sizes = [1, 8, 8], strides = [1, 1, 1]} : vector<4x8x8xf32> to vector<1x8x8xf32>
    %68 = vector.shape_cast %67 : vector<1x8x8xf32> to vector<8x8xf32>
    %69 = tpu.concatenate %62, %64, %66, %68 in 1 : vector<8x8xf32>, vector<8x8xf32>, vector<8x8xf32>, vector<8x8xf32> -> vector<8x32xf32>
    %70 = arith.truncf %69 : vector<8x32xf32> to vector<8x32xbf16>
    %c0_15 = arith.constant 0 : index
    %c0_16 = arith.constant 0 : index
    %71 = vector.load %arg5[%c0_15, %c0_16] : memref<32x32xbf16, #tpu.memory_space<vmem>>, vector<32x32xbf16>
    %cst_17 = arith.constant dense<0.000000e+00> : vector<8x32xf32>
    %72 = tpu.matmul %70, %71, %cst_17 {dimension_numbers = #tpu.dot_dimension_numbers<[1], [0], [0], [1], [0, 0, 1, 1], [], []>} : vector<8x32xbf16>, vector<32x32xbf16>, vector<8x32xf32> -> vector<8x32xf32>
    %c0_18 = arith.constant 0 : index
    %c0_19 = arith.constant 0 : index
    %73 = vector.load %arg6[%c0_18, %c0_19] : memref<1x32xf32, #tpu.memory_space<vmem>>, vector<1x32xf32>
    %74 = vector.broadcast %73 : vector<1x32xf32> to vector<8x32xf32>
    %75 = arith.addf %72, %74 : vector<8x32xf32>
    %76 = arith.addf %75, %1 : vector<8x32xf32>
    %c0_20 = arith.constant 0 : index
    %c0_21 = arith.constant 0 : index
    %77 = vector.load %arg7[%c0_20, %c0_21] : memref<1x32xf32, #tpu.memory_space<vmem>>, vector<1x32xf32>
    %c0_22 = arith.constant 0 : index
    %c0_23 = arith.constant 0 : index
    %78 = vector.load %arg8[%c0_22, %c0_23] : memref<1x32xf32, #tpu.memory_space<vmem>>, vector<1x32xf32>
    %cst_24 = arith.constant dense<0.000000e+00> : vector<8xf32>
    %79 = vector.multi_reduction <add>, %76, %cst_24 [1] : vector<8x32xf32> to vector<8xf32>
    %80 = vector.shape_cast %79 : vector<8xf32> to vector<8x1xf32>
    %cst_25 = arith.constant 3.200000e+01 : f32
    %81 = vector.broadcast %cst_25 : f32 to vector<8x1xf32>
    %82 = arith.divf %80, %81 : vector<8x1xf32>
    %83 = vector.broadcast %82 : vector<8x1xf32> to vector<8x32xf32>
    %84 = arith.subf %76, %83 : vector<8x32xf32>
    %85 = arith.mulf %84, %84 : vector<8x32xf32>
    %cst_26 = arith.constant dense<0.000000e+00> : vector<8xf32>
    %86 = vector.multi_reduction <add>, %85, %cst_26 [1] : vector<8x32xf32> to vector<8xf32>
    %87 = vector.shape_cast %86 : vector<8xf32> to vector<8x1xf32>
    %cst_27 = arith.constant 3.200000e+01 : f32
    %88 = vector.broadcast %cst_27 : f32 to vector<8x1xf32>
    %89 = arith.divf %87, %88 : vector<8x1xf32>
    %cst_28 = arith.constant 9.99999996E-13 : f32
    %90 = vector.broadcast %cst_28 : f32 to vector<8x1xf32>
    %91 = arith.addf %89, %90 : vector<8x1xf32>
    %92 = math.sqrt %91 : vector<8x1xf32>
    %93 = vector.broadcast %92 : vector<8x1xf32> to vector<8x32xf32>
    %94 = arith.divf %84, %93 : vector<8x32xf32>
    %95 = vector.broadcast %77 : vector<1x32xf32> to vector<8x32xf32>
    %96 = arith.mulf %95, %94 : vector<8x32xf32>
    %97 = vector.broadcast %78 : vector<1x32xf32> to vector<8x32xf32>
    %98 = arith.addf %96, %97 : vector<8x32xf32>
    %c0_29 = arith.constant 0 : index
    %c0_30 = arith.constant 0 : index
    %c0_31 = arith.constant 0 : index
    %99 = vector.load %arg9[%c0_29, %c0_30, %c0_31] : memref<1x8x32xf32, #tpu.memory_space<vmem>>, vector<1x8x32xf32>
    %100 = vector.shape_cast %99 : vector<1x8x32xf32> to vector<8x32xf32>
    %101 = vector.shape_cast %98 : vector<8x32xf32> to vector<1x8x32xf32>
    tpu.vector_store %arg9[%c0_29, %c0_30, %c0_31], %101 {strides = array<i32>} : memref<1x8x32xf32, #tpu.memory_space<vmem>>, vector<1x8x32xf32>,
    return
  }
  func.func @transform_0(%arg0: i32) -> (i32, i32, i32) {
    %c0_i32 = arith.constant 0 : i32
    %c0_i32_0 = arith.constant 0 : i32
    %c0_i32_1 = arith.constant 0 : i32
    return %arg0, %c0_i32, %c0_i32_0 : i32, i32, i32
  }
  func.func @transform_1(%arg0: i32) -> (i32, i32, i32, i32) {
    %c0_i32 = arith.constant 0 : i32
    %c0_i32_0 = arith.constant 0 : i32
    %c0_i32_1 = arith.constant 0 : i32
    %c0_i32_2 = arith.constant 0 : i32
    return %arg0, %c0_i32, %c0_i32_0, %c0_i32_1 : i32, i32, i32, i32
  }
  func.func @transform_2(%arg0: i32) -> (i32, i32) {
    %c0_i32 = arith.constant 0 : i32
    %c0_i32_0 = arith.constant 0 : i32
    %c0_i32_1 = arith.constant 0 : i32
    return %c0_i32, %c0_i32_0 : i32, i32
  }
  func.func @transform_3(%arg0: i32) -> (i32, i32) {
    %c0_i32 = arith.constant 0 : i32
    %c0_i32_0 = arith.constant 0 : i32
    %c0_i32_1 = arith.constant 0 : i32
    return %c0_i32, %c0_i32_0 : i32, i32
  }
  func.func @transform_4(%arg0: i32) -> (i32, i32) {
    %c0_i32 = arith.constant 0 : i32
    %c0_i32_0 = arith.constant 0 : i32
    %c0_i32_1 = arith.constant 0 : i32
    return %c0_i32, %c0_i32_0 : i32, i32
  }
  func.func @transform_5(%arg0: i32) -> (i32, i32) {
    %c0_i32 = arith.constant 0 : i32
    %c0_i32_0 = arith.constant 0 : i32
    %c0_i32_1 = arith.constant 0 : i32
    return %c0_i32, %c0_i32_0 : i32, i32
  }
  func.func @transform_6(%arg0: i32) -> (i32, i32) {
    %c0_i32 = arith.constant 0 : i32
    %c0_i32_0 = arith.constant 0 : i32
    %c0_i32_1 = arith.constant 0 : i32
    return %c0_i32, %c0_i32_0 : i32, i32
  }
  func.func @transform_7(%arg0: i32) -> (i32, i32) {
    %c0_i32 = arith.constant 0 : i32
    %c0_i32_0 = arith.constant 0 : i32
    %c0_i32_1 = arith.constant 0 : i32
    return %c0_i32, %c0_i32_0 : i32, i32
  }
  func.func @transform_8(%arg0: i32) -> (i32, i32, i32) {
    %c0_i32 = arith.constant 0 : i32
    %c0_i32_0 = arith.constant 0 : i32
    %c0_i32_1 = arith.constant 0 : i32
    return %arg0, %c0_i32, %c0_i32_0 : i32, i32, i32
  }
}

</mosaic_0001>

<bundles_post_ra>
// kernel: tpu_custom_call.1
= control target key start
LH: loop header
LB: loop body
LE: loop exit
PB: predicated region body
PF: predicated region fallthrough
CT: control target
= control target key end

     0   :  { %s1970_s0 = inlined_call_operand.hbm [shape: f32[2,8,32], index: 0, kind: input, shape index: {}]   ;;  %s1971_s1 = inlined_call_operand.hbm [shape: f32[2,1,1,8], index: 1, kind: input, shape index: {}]   ;;  %s1972_s2 = inlined_call_operand.hbm [shape: bf16[32,96], index: 2, kind: input, shape index: {}]   ;;  %s1973_s3 = inlined_call_operand.vmem [shape: f32[1,96], index: 3, kind: input, shape index: {}]   ;;  %s1974_s4 = inlined_call_operand.hbm [shape: bf16[32,32], index: 4, kind: input, shape index: {}]   ;;  %s1975_s5 = inlined_call_operand.vmem [shape: f32[1,32], index: 5, kind: input, shape index: {}]   ;;  %s1976_s6 = inlined_call_operand.vmem [shape: f32[1,32], index: 6, kind: input, shape index: {}]   ;;  %s1977_s7 = inlined_call_operand.vmem [shape: f32[1,32], index: 7, kind: input, shape index: {}]   ;;  %s1978_s8 = inlined_call_operand.hbm [shape: f32[2,8,32], index: 8, kind: output, shape index: {}]  }
   0x1   :  { %1984 = sst [smem:[#allocation18_spill]] %s1970_s0 }
   0x2   :  { %1985 = sst [smem:[#allocation19_spill]] %s1972_s2 }
   0x3   :  { %1986 = sst [smem:[#allocation20_spill]] %s1974_s4 }
   0x4   :  { %13 = vsyncpa [#allocation3], 0 }
   0x5   :  { %15 = vsyncpa [#allocation3 + $0x1], 0 }
   0x6   :  { %16 = vsyncpa [#allocation6], 0 }
   0x7   :  { %18 = vsyncpa [#allocation6 + $0x1], 0 }
   0x8   :  { %19 = vsyncpa [#allocation9], 0 }
   0x9   :  { %20 = vsyncpa [#allocation4], 0 }
   0xa   :  { %22 = vsyncpa [#allocation4 + $0x1], 0  ;;  %s1652_s27 = smov 0   ;;  %s1654_s28 = smov 0  }
   0xb   :  { %s1656_s29 = smov 0   ;;  %s1658_s30 = smov 0  }
   0xc LB: > { %1987 = sst [smem:[#allocation16_spill]] %s1584_s29  ;;  %s1673_s9 = sadd.s32 4294967295, %s1588_s30   ;;  %s1588_s30 = sphi %s1658_s30, %s2013_s30   ;;  %s1584_s29 = sphi %s1656_s29, %s2010_s29   ;;  %s1580_s28 = sphi %s1654_s28, %s2012_s28   ;;  %s1576_s27 = sphi %s1652_s27, %s2011_s27  }
   0xd   : > { %s1174_s10 = sadd.s32 4294967294, %s1588_s30   ;;  %p48_p0 = scmp.ne.s32.totalorder %s1580_s28, %s1576_s27 }
   0xe   : > { %p1979_p1 = scmp.eq.s32.totalorder %s1673_s9, 0  ;;  %p230_p3 = scmp.eq.s32.totalorder %s1174_s10, 1 }
   0xf   : > { %p1175_p5 = scmp.ge.s32.totalorder %s1588_s30, 1  ;;  %p237_p7 = scmp.lt.s32.totalorder %s1588_s30, 3 }
  0x10   : > { %p1682_p4 = por %p1979_p1, %p48_p0  ;;  %p1687_p6 = por %p230_p3, %p48_p0 }
  0x11   : > { %p1692_p8 = pnand %p1175_p5, %p237_p7  ;;  %s1590_s14 = smov [#allocation7]  }
  0x12   : > { %s1988_s11 = scalar_select %p1682_p4, 1, 0 }
  0x13   : > { %s1989_s12 = scalar_select %p1687_p6, 1, 0 }
  0x14   : > { %s1990_s13 = scalar_select %p1692_p8, 1, 0 }
  0x15   : > { %s249_s15 = sshll.u32 %s1590_s14, 4  ;;  %p1310_p9 = pneg %p1692_p8  ;;  %s250_s15 = int_to_ptr.vmem [resolvable:$true] %s249_s15 }
  0x16   : > { %s1591_s17 = smov [#allocation8]   ;;  %s1415_s19 = scalar_lea.vmem %s250_s15, 256 }
  0x17   : > { %p1701_p11 = pnand %p1310_p9, %p1979_p1  ;;  %s265_s18 = sshll.u32 %s1591_s17, 4  ;;  %s266_s18 = int_to_ptr.vmem [resolvable:$true] %s265_s18 }
  0x18   : > { %p1416_p13 = scmp.ne.s32.totalorder %s250_s15, %s1415_s19  ;;  %p1423_p5 = scmp.lt.s32.totalorder %s250_s15, %s250_s15 }
  0x19   : > { %p1406_p12 = pneg %p1701_p11  ;;  %p1424_p7 = scmp.lt.s32.totalorder %s1415_s19, %s1415_s19 }
  0x1b   : > { %p1418_p0 = pnand %p1416_p13, %p1406_p12  ;;  %p1425_p10 = por %p1424_p7, %p1423_p5 }
  0x1d   : > { %p1419_p3 = pneg %p1418_p0 }
  0x1f   : > { %p1426_p9 = pnand %p1425_p10, %p1419_p3 }
  0x21   : > { %1429 = shalt.err (!%p1426_p9)
}
  0x22   : > { %s1592_s20 = smov 64   ;;  %s1593_s21 = smov 4  }
  0x23   : > { %s1992_s2 = sld [smem:[#allocation19_spill]]  ;;  %s1441_s24 = scalar_lea.vmem %s266_s18, 256 }
  0x24   : > { %p1442_p1 = scmp.ne.s32.totalorder %s266_s18, %s1441_s24  ;;  %p1449_p2 = scmp.lt.s32.totalorder %s266_s18, %s266_s18 }
  0x25   : > { %p1450_p6 = scmp.lt.s32.totalorder %s1441_s24, %s1441_s24 }
  0x26   : > { %p1444_p13 = pnand %p1442_p1, %p1406_p12 }
  0x27   : > { %p1451_p5 = por %p1450_p6, %p1449_p2 }
  0x28   : > { %p1445_p0 = pneg %p1444_p13 }
  0x29   : > { %1313 = dma.hbm_to_vmem [thread:$0]  (!%p1701_p11), %s1992_s2, 256, %s250_s15, [#allocation6], %s1592_s20, %s1592_s20, %s1593_s21  }
  0x2a   : > { %p1452_p10 = pnand %p1451_p5, %p1445_p0 }
  0x2c   : > { %1455 = shalt.err (!%p1452_p10)
}
  0x2d   : > { %s1993_s4 = sld [smem:[#allocation20_spill]]  ;;  %s1724_s10 = sadd.s32 1, %s1588_s30  }
  0x2e   : > { %s35_s14 = sadd.s32 1, %s1584_s29  ;;  %s32_s15 = ssub.s32 %s1588_s30, %s1724_s10 }
  0x2f   : > { %p42_p1 = scmp.ne.s32.totalorder %s1584_s29, %s1580_s28  ;;  %p33_p2 = scmp.eq.s32.totalorder %s32_s15, 0 }
  0x30   : > { %p43_p6 = scmp.eq.s32.totalorder %s1588_s30, 0  ;;  %p1994_p12 = scmp.eq.s32.totalorder %s1673_s9, 1 }
  0x31   : > { %p1330_p7 = scmp.lt.s32.totalorder %s1588_s30, 2  ;;  %s1743_s19 = sand.u32 1, %s1584_s29  }
  0x32   : > { %p1734_p3 = por %p1994_p12, %p42_p1  ;;  %p44_p9 = por %p43_p6, %p42_p1 }
  0x33   : > { %1316 = dma.hbm_to_vmem [thread:$0]  (!%p1701_p11), %s1993_s4, 256, %s266_s18, [#allocation9], %s1592_s20, %s1592_s20, %s1593_s21  }
  0x34   : > { %s1995_s16 = scalar_select %p1734_p3, 1, 0 }
  0x35   : > { %s1740_s17 = scalar_select %p33_p2, %s1584_s29, %s35_s14  }
  0x36   : > { %s1179_s18 = sshll.u32 %s1743_s19, 3  ;;  %s1180_s20 = sshll.u32 %s1588_s30, 7 }
  0x37   : > { %1996 = sst [smem:[#allocation17_spill]] %s1740_s17  ;;  %s292_s24 = scalar_lea.vmem [#allocation2], %s1179_s18 }
  0x38   : > { %s1997_s0 = sld [smem:[#allocation18_spill]]  ;;  %s299_s25 = sshll.u32 %s292_s24, 4  ;;  %s1752_s25 = int_to_ptr.vmem [resolvable:$true] %s299_s25 }
  0x39   : > { %p1754_p11 = pnand %p1330_p7, %p44_p9  ;;  %s289_s15 = scalar_lea.sflag [#allocation3], %s1743_s19 }
  0x3b   : > { %p1458_p0 = pneg %p1754_p11 }
  0x3e   : > { %s1750_s23 = scalar_lea.hbm %s1997_s0, %s1180_s20  ;;  %s1461_s21 = scalar_lea.hbm %s1997_s0, 256 }
  0x3f   : > { %s1456_s2 = scalar_lea.hbm %s1750_s23, 128  ;;  %p1462_p1 = scmp.lt.s32.totalorder %s1750_s23, %s1997_s0 }
  0x40   : > { %p1457_p13 = scmp.ne.s32.totalorder %s1750_s23, %s1456_s2  ;;  %p1463_p2 = scmp.lt.s32.totalorder %s1461_s21, %s1456_s2 }
  0x42   : > { %p1459_p5 = pnand %p1458_p0, %p1457_p13  ;;  %p1464_p6 = por %p1463_p2, %p1462_p1 }
  0x44   : > { %p1460_p10 = pneg %p1459_p5 }
  0x46   : > { %p1465_p12 = pnand %p1464_p6, %p1460_p10 }
  0x48   : > { %1468 = shalt.err (!%p1465_p12)
}
  0x49   : > { %s1469_s14 = scalar_lea.vmem %s1752_s25, 128  ;;  %s1594_s18 = smov [#allocation2]  }
  0x4a   : > { %p1470_p7 = scmp.ne.s32.totalorder %s1752_s25, %s1469_s14  ;;  %s1474_s20 = sshll.u32 %s1594_s18, 4  ;;  %s1475_s20 = int_to_ptr.vmem [resolvable:$false] %s1474_s20 }
  0x4b   : > { %s1476_s4 = scalar_lea.vmem %s1475_s20, 256  ;;  %p1477_p5 = scmp.lt.s32.totalorder %s1752_s25, %s1475_s20 }
  0x4c   : > { %p1472_p9 = pnand %p1470_p7, %p1458_p0  ;;  %p1478_p3 = scmp.lt.s32.totalorder %s1476_s4, %s1469_s14 }
  0x4e   : > { %p1473_p13 = pneg %p1472_p9  ;;  %p1479_p4 = por %p1478_p3, %p1477_p5 }
  0x50   : > { %p1480_p1 = pnand %p1479_p4, %p1473_p13 }
  0x52   : > { %1483 = shalt.err (!%p1480_p1)
}
  0x53   : > { %1320 = dma.hbm_to_vmem [thread:$0]  (!%p1754_p11), %s1750_s23, 128, %s1752_s25, %s289_s15  }
  0x54   : > { %s1181_s2 = sshll.u32 %s1588_s30, 4  ;;  %s309_s21 = scalar_lea.vmem [#allocation5], %s1743_s19 }
  0x55   : > { %s316_s22 = sshll.u32 %s309_s21, 4  ;;  %s314_s20 = scalar_lea.hbm %s1971_s1, %s1181_s2  ;;  %s317_s22 = int_to_ptr.vmem [resolvable:$true] %s316_s22 }
  0x56   : > { %s1999_s4 = sand.u32 1, %s1588_s30   ;;  %s1484_s0 = scalar_lea.hbm %s314_s20, 16 }
  0x57   : > { %s307_s14 = scalar_lea.sflag [#allocation6], %s1999_s4  ;;  %p1485_p4 = scmp.ne.s32.totalorder %s314_s20, %s1484_s0 }
  0x58   : > { %s1489_s23 = scalar_lea.hbm %s1971_s1, 32  ;;  %p1490_p2 = scmp.lt.s32.totalorder %s314_s20, %s1971_s1 }
  0x59   : > { %p1487_p3 = pnand %p1485_p4, %p1458_p0  ;;  %p1491_p6 = scmp.lt.s32.totalorder %s1489_s23, %s1484_s0 }
  0x5b   : > { %p1488_p10 = pneg %p1487_p3  ;;  %p1492_p12 = por %p1491_p6, %p1490_p2 }
  0x5d   : > { %p1493_p7 = pnand %p1492_p12, %p1488_p10 }
  0x5f   : > { %1496 = shalt.err (!%p1493_p7)
}
  0x60   : > { %s1497_s15 = scalar_lea.vmem %s317_s22, 16  ;;  %s1595_s2 = smov [#allocation5]  }
  0x61   : > { %p1498_p9 = scmp.ne.s32.totalorder %s317_s22, %s1497_s15  ;;  %s1502_s21 = sshll.u32 %s1595_s2, 4  ;;  %s1503_s21 = int_to_ptr.vmem [resolvable:$false] %s1502_s21 }
  0x62   : > { %s1504_s29 = scalar_lea.vmem %s1503_s21, 32  ;;  %p1505_p1 = scmp.lt.s32.totalorder %s317_s22, %s1503_s21 }
  0x63   : > { %p1500_p13 = pnand %p1498_p9, %p1458_p0  ;;  %p1506_p4 = scmp.lt.s32.totalorder %s1504_s29, %s1497_s15 }
  0x65   : > { %p1501_p5 = pneg %p1500_p13  ;;  %p1507_p3 = por %p1506_p4, %p1505_p1 }
  0x67   : > { %p1508_p8 = pnand %p1507_p3, %p1501_p5 }
  0x69   : > { %1511 = shalt.err (!%p1508_p8)
}
  0x6a   : > { %1323 = dma.hbm_to_vmem [thread:$0]  (!%p1754_p11), %s314_s20, 16, %s317_s22, %s307_s14  }
  0x6b   : > { %p2000_p10 = scmp.ne.s32.totalorder %s1990_s13, 0 }
  0x6c   : > { %s1808_s0 = sand.u32 (!%p2000_p10), 1, %s1580_s28   ;;  %p2001_p0 = scmp.ne.s32.totalorder (!%p2000_p10), %s1988_s11, 0 }
  0x6d   : > { %325 = sbr.rel (%p2000_p10) target bundleno = 1933 (0x78d), region = 52  ;;  %s1183_s17 = sshll.u32 (!%p2000_p10), %s1808_s0, 3 }
  0x6e   : > { %s328_s24 = scalar_lea.sflag (!%p2000_p10), [#allocation3], %s1808_s0  ;;  %s331_s18 = scalar_lea.vmem (!%p2000_p10), [#allocation2], %s1183_s17 }
  0x72   : > { %1555 = dma.done.wait (%p2001_p0), %s328_s24, 128  }
  0x73   : > { %1557 = vsyncadd (%p2001_p0), %s328_s24, 4294967168  ;;  %s336_s13 = sand.u32 1, %s1673_s9   ;;  %s339_s22 = scalar_lea.vmem [#allocation5], %s1808_s0 }
  0x74   : > { %s337_s26 = scalar_lea.sflag [#allocation6], %s336_s13 }
  0x75   : > { %1559 = dma.done.wait (%p2001_p0), %s337_s26, 16  }
  0x76   : > { %1561 = vsyncadd (%p2001_p0), %s337_s26, 4294967280  ;;  %p2002_p8 = scmp.eq.s32.totalorder %s1673_s9, 0 }
  0x78   : > { %1563 = dma.done.wait (%p2002_p8), [#allocation6], 256   ;;  %p2003_p11 = pmov %p2002_p8 }
  0x79   : > { %p2004_p2 = pmov %p2002_p8 }
  0x7a   : > { %1565 = vsyncadd (%p2003_p11), [#allocation6], 4294967040 }
  0x7b   : > { %1567 = dma.done.wait (%p2004_p2), [#allocation9], 256   ;;  %p2005_p6 = pmov %p2004_p2 }
  0x7c   : > { %v1596_v0 = vmov 0.0   ;;  %vm1597_vm0 = vmmov 0   ;;  %v1380_v1 = vld [vmem:[#allocation7 + $0x8] sm:$0xff]   ;;  %v1381_v2 = vld [vmem:[#allocation7] sm:$0xff]   ;;  %vm411_vm1 = vcmask 261120   ;;  %s1598_s4 = smov 104  }
  0x7d   : > { %1569 = vsyncadd (%p2005_p6), [#allocation9], 4294967040  ;;  %1232 = vmatprep.subr.bf16.mxu0 %v1596_v0  ;;  %1236 = vmatprep.mubr.msk.bf16.mxu0 %vm1597_vm0, %v1596_v0  ;;  %v1838_v3 = vld [vmem:[%s331_s18] sm:$0xff]  ;;  %s1599_s14 = smov 120   ;;  %s1600_s23 = smov 112   ;;  %vm493_vm2 = vcmask 64512  }
  0x7e   : > { %1240 = vmatprep.subr.bf16.mxu1 %v1596_v0  ;;  %1242 = vmatprep.mubr.msk.bf16.mxu1 %vm1597_vm0, %v1596_v0  ;;  %v387_v4 = vpack.c.bf16 %v1838_v3, %v1838_v3  ;;  %v1187_v5 = vld [vmem:[%s1973_s3] ss:$0 sm:$0xff]  ;;  %s1601_s25 = smov 96   ;;  %s1602_s19 = smov 64   ;;  %vm740_vm3 = vcmask 1043456   ;;  %vm941_vm4 = vcmask 130048  }
  0x7f   : > { %1233 = vmatpush3.bf16.msra.mxu0 %v1380_v1  ;;  %v1191_v34 = vld [vmem:[%s339_s22] ss:$0 sm:$0xff]  ;;  %s1603_s15 = smov 8   ;;  %s1604_s2 = smov 16   ;;  %vm943_vm5 = vcmask 195584  }
  0x80   : > { %1234 = vmatprep.subr.bf16.mxu0 %v1596_v0  ;;  %s1605_s21 = smov 24   ;;  %s1207_s11 = sshll.u32 %s1673_s9, 7 }
  0x81   : > { %s383_s20 = scalar_lea.vmem [#allocation10], %s1183_s17  ;;  %p2006_p7 = scmp.ne.s32.totalorder %s1995_s16, 0 }
  0x83   : > { %1235 = vmatpush3.bf16.msra.mxu0 %v1381_v2 }
  0x84   : > { %1246 = vmatprep.subr.bf16.mxu0 %v1596_v0 }
  0x86   : > { %1237 = vmatmul.mubr.msk.bf16.vlgmr.msra.gmra.mxu0 %vm411_vm1, %v387_v4 }
  0x87   : > { %1248 = vmatprep.mubr.msk.bf16.mxu0 %vm1597_vm0, %v1596_v0 }
 0x146   : > { %v449_v6 = vpop.f32.mrf.mxu0 }
 0x147   : > { %v450_v7 = vadd.f32 %v1187_v5, %v449_v6 }
 0x148   : > { %v1238_v8 = vpop.f32.mrf.mxu0 }
 0x149   : > { %477 = vrot.lane.b32.xlu1 %v450_v7, %s1598_s4  ;;  %471 = vrot.lane.b32.xlu0 %v450_v7, %s1599_s14  ;;  %v1850_v10 = vpack.c.bf16 %v450_v7, %v450_v7  ;;  %v455_v12 = vmul.f32 0.35355338, %v450_v7 }
 0x14a   : > { %v452_v9 = vpop.f32.mrf.mxu0 }
 0x14b   : > { %v466_v21 = vpack.c.bf16 %v455_v12, %v455_v12 }
 0x14c   : > { %v1239_v11 = vpop.f32.mrf.mxu0 }
 0x14d   : > { %474 = vrot.lane.b32.xlu0 %v450_v7, %s1600_s23  ;;  %491 = vrot.lane.b32.xlu1 %v1850_v10, %s1601_s25 }
 0x151   : > { %457 = vrot.lane.b32.xlu1 %v455_v12, %s1599_s14 }
 0x1bb   : > { %v478_v13 = vpop.permute.xlu1 %477  ;;  %v472_v14 = vpop.permute.xlu0 %471 }
 0x1bc   : > { %v1853_v15 = vpack.c.bf16 %v478_v13, %v478_v13  ;;  %v1855_v16 = vpack.c.bf16 %v472_v14, %v472_v14 }
 0x1be   : > { %541 = vrot.lane.b32.xlu0 %v1855_v16, %s1601_s25  ;;  %639 = vrot.lane.b32.xlu1 %v1853_v15, %s1601_s25 }
 0x1bf   : > { %v475_v17 = vpop.permute.xlu0 %474  ;;  %v492_v18 = vpop.permute.xlu1 %491 }
 0x1c0   : > { %v1859_v19 = vpack.c.bf16 %v475_v17, %v475_v17  ;;  %v498_v20 = vsel %vm493_vm2, %v492_v18, 0 }
 0x1c1   : > { %1241 = vmatpush3.bf16.xpose.msra.mxu1 %v498_v20 }
 0x1c2   : > { %590 = vrot.lane.b32.xlu0 %v1859_v19, %s1601_s25  ;;  %463 = vrot.lane.b32.xlu1 %v455_v12, %s1598_s4  ;;  %s1065_s4 = sshll.u32 %s383_s20, 4  ;;  %s1063_s25 = scalar_lea.hbm %s1978_s8, %s1207_s11  ;;  %s1066_s4 = int_to_ptr.vmem [resolvable:$true] %s1065_s4 }
 0x1c3   : > { %1252 = vmatprep.subr.bf16.mxu1 %v1596_v0  ;;  %v458_v24 = vpop.permute.xlu1 %457 }
 0x1c4   : > { %v467_v28 = vpack.c.bf16 %v458_v24, %v458_v24 }
 0x1c6   : > { %460 = vrot.lane.b32.xlu0 %v455_v12, %s1600_s23 }
 0x1c8   : > { %1243 = vmatmul.mubr.msk.bf16.vlgmr.msra.gmra.mxu1 %vm493_vm2, %v466_v21 }
 0x1c9   : > { %1254 = vmatprep.mubr.msk.bf16.mxu1 %vm1597_vm0, %v1596_v0 }
 0x230   : > { %v542_v22 = vpop.permute.xlu0 %541  ;;  %v640_v27 = vpop.permute.xlu1 %639 }
 0x231   : > { %v547_v23 = vsel %vm493_vm2, %v542_v22, 0  ;;  %v645_v30 = vsel %vm493_vm2, %v640_v27, 0 }
 0x232   : > { %1247 = vmatpush3.bf16.xpose.msra.mxu0 %v547_v23 }
 0x233   : > { %1258 = vmatprep.subr.bf16.mxu0 %v1596_v0 }
 0x234   : > { %v591_v25 = vpop.permute.xlu0 %590  ;;  %v464_v32 = vpop.permute.xlu1 %463 }
 0x235   : > { %v596_v26 = vsel %vm493_vm2, %v591_v25, 0  ;;  %v469_v33 = vpack.c.bf16 %v464_v32, %v464_v32 }
 0x236   : > { %1253 = vmatpush3.bf16.xpose.msra.mxu1 %v596_v26 }
 0x237   : > { %1264 = vmatprep.subr.bf16.mxu1 %v1596_v0 }
 0x238   : > { %v461_v29 = vpop.permute.xlu0 %460 }
 0x239   : > { %1249 = vmatmul.mubr.msk.bf16.vlgmr.msra.gmra.mxu0 %vm493_vm2, %v467_v28  ;;  %v468_v31 = vpack.c.bf16 %v461_v29, %v461_v29 }
 0x23a   : > { %1259 = vmatpush3.bf16.xpose.msra.mxu0 %v645_v30  ;;  %1260 = vmatprep.mubr.msk.bf16.mxu0 %vm1597_vm0, %v1596_v0 }
 0x23b   : > { %1270 = vmatprep.subr.bf16.mxu0 %v1596_v0 }
 0x23d   : > { %1255 = vmatmul.mubr.msk.bf16.vlgmr.msra.gmra.mxu1 %vm493_vm2, %v468_v31 }
 0x23e   : > { %1266 = vmatprep.mubr.msk.bf16.mxu1 %vm1597_vm0, %v1596_v0 }
 0x241   : > { %1261 = vmatmul.mubr.msk.bf16.vlgmr.msra.gmra.mxu0 %vm493_vm2, %v469_v33 }
 0x242   : > { %1272 = vmatprep.mubr.msk.bf16.mxu0 %vm1597_vm0, %v1596_v0 }
 0x288   : > { %v534_v35 = vpop.f32.mrf.mxu1 }
 0x289   : > { %v535_v36 = vadd.f32 %v1191_v34, %v534_v35 }
 0x28a   : > { %v1244_v37 = vpop.f32.mrf.mxu1 }
 0x28b   : > { %v687_v38 = vsel %vm493_vm2, %v535_v36, -inf }
 0x28c   : > { %688 = vmax.xlane.f32.xlu0 %v687_v38  ;;  %v537_v39 = vpop.f32.mrf.mxu1 }
 0x28e   : > { %v1245_v40 = vpop.f32.mrf.mxu1 }
 0x2f9   : > { %v583_v41 = vpop.f32.mrf.mxu0 }
 0x2fa   : > { %v584_v42 = vadd.f32 %v1191_v34, %v583_v41 }
 0x2fb   : > { %v1250_v43 = vpop.f32.mrf.mxu0 }
 0x2fc   : > { %v690_v44 = vsel %vm493_vm2, %v584_v42, -inf }
 0x2fd   : > { %v632_v45 = vpop.f32.mrf.mxu1  ;;  %691 = vmax.xlane.f32.xlu1 %v690_v44  ;;  %v586_v46 = vpop.f32.mrf.mxu0 }
 0x2fe   : > { %v633_v47 = vadd.f32 %v1191_v34, %v632_v45  ;;  %v1382_v45 = vld [vmem:[#allocation8 + $0x8] sm:$0xff]   ;;  %v1383_v46 = vld [vmem:[#allocation8] sm:$0xff]  }
 0x2ff   : > { %v1251_v48 = vpop.f32.mrf.mxu0  ;;  %v1256_v49 = vpop.f32.mrf.mxu1 }
 0x300   : > { %v693_v50 = vsel %vm493_vm2, %v633_v47, -inf }
 0x301   : > { %694 = vmax.xlane.f32.xlu0 %v693_v50  ;;  %v635_v51 = vpop.f32.mrf.mxu1  ;;  %v681_v52 = vpop.f32.mrf.mxu0 }
 0x302   : > { %v682_v53 = vadd.f32 %v1191_v34, %v681_v52 }
 0x303   : > { %v1257_v54 = vpop.f32.mrf.mxu1  ;;  %v1262_v55 = vpop.f32.mrf.mxu0 }
 0x304   : > { %v696_v56 = vsel %vm493_vm2, %v682_v53, -inf }
 0x305   : > { %697 = vmax.xlane.f32.xlu0 %v696_v56  ;;  %v684_v57 = vpop.f32.mrf.mxu0 }
 0x307   : > { %v1263_v58 = vpop.f32.mrf.mxu0 }
 0x30e   : > { %735 = vrot.lane.b32.xlu1 %v1850_v10, %s1602_s19 }
 0x315   : > { %v689_v59 = vpop.xlane.xlu0 %688 }
 0x316   : > { %v699_v60 = vsub.f32 %v535_v36, %v689_v59 }
 0x318   : > { %v703_v61 = vmul.f32 1.442695, %v699_v60 }
 0x31a   : > { %1384 = vpow2.f32 %v703_v61 }
 0x327   : > { %v1385_v62 = vpop.eup %1384 }
 0x328   : > { %v711_v63 = vsel %vm493_vm2, %v1385_v62, 0.0 }
 0x332   : > { %712 = vadd.xlane.f32.xlu1 %v711_v63 }
 0x386   : > { %v692_v1 = vpop.xlane.xlu1 %691 }
 0x387   : > { %v700_v2 = vsub.f32 %v584_v42, %v692_v1 }
 0x389   : > { %v705_v4 = vmul.f32 1.442695, %v700_v2  ;;  %v1200_v2 = vld [vmem:[%s1975_s5] ss:$0 sm:$0xff] }
 0x38a   : > { %v695_v5 = vpop.xlane.xlu0 %694  ;;  %v736_v6 = vpop.permute.xlu1 %735 }
 0x38b   : > { %1386 = vpow2.f32 %v705_v4  ;;  %v701_v7 = vsub.f32 %v633_v47, %v695_v5  ;;  %v742_v8 = vsel %vm740_vm3, %v736_v6, 0 }
 0x38c   : > { %1265 = vmatpush3.bf16.msra.mxu1 %v742_v8 }
 0x38d   : > { %v707_v9 = vmul.f32 1.442695, %v701_v7  ;;  %1276 = vmatprep.subr.bf16.mxu1 %v1596_v0 }
 0x38e   : > { %v698_v10 = vpop.xlane.xlu0 %697 }
 0x38f   : > { %1388 = vpow2.f32 %v707_v9  ;;  %v702_v11 = vsub.f32 %v682_v53, %v698_v10 }
 0x391   : > { %v709_v12 = vmul.f32 1.442695, %v702_v11 }
 0x393   : > { %1390 = vpow2.f32 %v709_v12 }
 0x398   : > { %v1387_v13 = vpop.eup %1386 }
 0x399   : > { %v714_v14 = vsel %vm493_vm2, %v1387_v13, 0.0 }
 0x39a   : > { %715 = vadd.xlane.f32.xlu0 %v714_v14 }
 0x39c   : > { %v1389_v17 = vpop.eup %1388 }
 0x39d   : > { %v717_v18 = vsel %vm493_vm2, %v1389_v17, 0.0 }
 0x39e   : > { %718 = vadd.xlane.f32.xlu1 %v717_v18 }
 0x3a0   : > { %v1391_v20 = vpop.eup %1390 }
 0x3a1   : > { %v720_v21 = vsel %vm493_vm2, %v1391_v20, 0.0 }
 0x3a2   : > { %721 = vadd.xlane.f32.xlu0 %v720_v21 }
 0x3af   : > { %832 = vrot.lane.b32.xlu1 %v1859_v19, %s1602_s19 }
 0x3b3   : > { %880 = vrot.lane.b32.xlu1 %v1853_v15, %s1602_s19 }
 0x3b8   : > { %784 = vrot.lane.b32.xlu0 %v1855_v16, %s1602_s19  ;;  %s1052_s19 = scalar_lea.sflag [#allocation4], %s1808_s0 }
 0x3bb   : > { %v713_v22 = vpop.xlane.xlu1 %712 }
 0x3bc   : > { %1392 = vrcp.f32 %v713_v22 }
 0x3c9   : > { %v1393_v23 = vpop.eup %1392 }
 0x3ca   : > { %v727_v24 = vmul.f32 %v1393_v23, %v1385_v62 }
 0x3cc   : > { %v731_v25 = vpack.c.bf16 %v727_v24, %v727_v24 }
 0x3ce   : > { %1267 = vmatmul.mubr.msk.bf16.vlgmr.msra.gmra.mxu1 %vm493_vm2, %v731_v25 }
 0x3cf   : > { %1278 = vmatprep.mubr.msk.bf16.mxu1 %vm1597_vm0, %v1596_v0 }
 0x423   : > { %v716_v26 = vpop.xlane.xlu0 %715 }
 0x424   : > { %1394 = vrcp.f32 %v716_v26 }
 0x427   : > { %v719_v27 = vpop.xlane.xlu1 %718 }
 0x428   : > { %1396 = vrcp.f32 %v719_v27  ;;  %v1204_v27 = vld [vmem:[%s1976_s6] ss:$0 sm:$0xff] }
 0x42b   : > { %v833_v19 = vpop.permute.xlu1 %832  ;;  %v722_v28 = vpop.xlane.xlu0 %721 }
 0x42c   : > { %v838_v15 = vsel %vm740_vm3, %v833_v19, 0  ;;  %1398 = vrcp.f32 %v722_v28  ;;  %v1205_v28 = vld [vmem:[%s1977_s7] ss:$0 sm:$0xff] }
 0x42d   : > { %1277 = vmatpush3.bf16.msra.mxu1 %v838_v15 }
 0x42e   : > { %1288 = vmatprep.subr.bf16.mxu1 %v1596_v0 }
 0x42f   : > { %v785_v16 = vpop.permute.xlu0 %784  ;;  %v881_v32 = vpop.permute.xlu1 %880 }
 0x430   : > { %v790_v29 = vsel %vm740_vm3, %v785_v16, 0  ;;  %v886_v35 = vsel %vm740_vm3, %v881_v32, 0 }
 0x431   : > { %v1395_v30 = vpop.eup %1394  ;;  %1271 = vmatpush3.bf16.msra.mxu0 %v790_v29 }
 0x432   : > { %1282 = vmatprep.subr.bf16.mxu0 %v1596_v0  ;;  %v728_v31 = vmul.f32 %v1395_v30, %v1387_v13 }
 0x434   : > { %v732_v33 = vpack.c.bf16 %v728_v31, %v728_v31 }
 0x435   : > { %v1397_v34 = vpop.eup %1396 }
 0x436   : > { %1273 = vmatmul.mubr.msk.bf16.vlgmr.msra.gmra.mxu0 %vm493_vm2, %v732_v33  ;;  %v729_v36 = vmul.f32 %v1397_v34, %v1389_v17 }
 0x437   : > { %1283 = vmatpush3.bf16.msra.mxu0 %v886_v35  ;;  %1284 = vmatprep.mubr.msk.bf16.mxu0 %vm1597_vm0, %v1596_v0 }
 0x438   : > { %v733_v37 = vpack.c.bf16 %v729_v36, %v729_v36 }
 0x439   : > { %v1399_v38 = vpop.eup %1398 }
 0x43a   : > { %1279 = vmatmul.mubr.msk.bf16.vlgmr.msra.gmra.mxu1 %vm493_vm2, %v733_v37  ;;  %v730_v39 = vmul.f32 %v1399_v38, %v1391_v20 }
 0x43b   : > { %1292 = vmatprep.mubr.msk.bf16.mxu1 %vm1597_vm0, %v1596_v0  ;;  %1289 = vmatpush3.bf16.msra.mxu1 %v1382_v45 }
 0x43c   : > { %v734_v40 = vpack.c.bf16 %v730_v39, %v730_v39  ;;  %1290 = vmatprep.subr.bf16.mxu1 %v1596_v0 }
 0x43e   : > { %1285 = vmatmul.mubr.msk.bf16.vlgmr.msra.gmra.mxu0 %vm493_vm2, %v734_v40 }
 0x43f   : > { %1291 = vmatpush3.bf16.msra.mxu1 %v1383_v46 }
 0x48e   : > { %v778_v41 = vpop.f32.mrf.mxu1 }
 0x490   : > { %v1268_v42 = vpop.f32.mrf.mxu1 }
 0x492   : > { %v781_v43 = vpop.f32.mrf.mxu1 }
 0x494   : > { %v1269_v44 = vpop.f32.mrf.mxu1 }
 0x4f6   : > { %v826_v47 = vpop.f32.mrf.mxu0 }
 0x4f7   : > { %929 = vrot.lane.b32.xlu0 %v826_v47, %s1603_s15  ;;  %s1512_s15 = scalar_lea.vmem %s1066_s4, 128 }
 0x4f8   : > { %v1274_v48 = vpop.f32.mrf.mxu0  ;;  %p1513_p12 = scmp.ne.s32.totalorder %s1066_s4, %s1512_s15 }
 0x4fa   : > { %v829_v49 = vpop.f32.mrf.mxu0  ;;  %v874_v50 = vpop.f32.mrf.mxu1  ;;  %p1514_p9 = pnand %p1513_p12, %p2006_p7 }
 0x4fb   : > { %933 = vrot.lane.b32.xlu1 %v874_v50, %s1604_s2  ;;  %s1606_s2 = smov [#allocation10]  }
 0x4fc   : > { %v1275_v51 = vpop.f32.mrf.mxu0  ;;  %v1280_v52 = vpop.f32.mrf.mxu1  ;;  %p1515_p13 = pneg %p1514_p9  ;;  %s1516_s9 = sshll.u32 %s1606_s2, 4  ;;  %s1517_s9 = int_to_ptr.vmem [resolvable:$false] %s1516_s9 }
 0x4fd   : > { %s1518_s17 = scalar_lea.vmem %s1517_s9, 256  ;;  %p1519_p5 = scmp.lt.s32.totalorder %s1066_s4, %s1517_s9 }
 0x4fe   : > { %v877_v53 = vpop.f32.mrf.mxu1  ;;  %v922_v54 = vpop.f32.mrf.mxu0  ;;  %p1520_p1 = scmp.lt.s32.totalorder %s1518_s17, %s1512_s15 }
 0x4ff   : > { %937 = vrot.lane.b32.xlu0 %v922_v54, %s1605_s21 }
 0x500   : > { %v1281_v55 = vpop.f32.mrf.mxu1  ;;  %v1286_v56 = vpop.f32.mrf.mxu0  ;;  %p1521_p4 = por %p1520_p1, %p1519_p5 }
 0x502   : > { %v925_v57 = vpop.f32.mrf.mxu0  ;;  %p1522_p3 = pnand %p1521_p4, %p1515_p13 }
 0x504   : > { %v1287_v0 = vpop.f32.mrf.mxu0 }
 0x569   : > { %v930_v58 = vpop.permute.xlu0 %929 }
 0x56a   : > { %v940_v60 = vsel %vm493_vm2, %v778_v41, %v930_v58 }
 0x56d   : > { %v934_v59 = vpop.permute.xlu1 %933 }
 0x56e   : > { %v942_v61 = vsel %vm941_vm4, %v940_v60, %v934_v59 }
 0x571   : > { %v938_v62 = vpop.permute.xlu0 %937 }
 0x572   : > { %v944_v63 = vsel %vm943_vm5, %v942_v61, %v938_v62 }
 0x573   : > { %v945_v1 = vpack.c.bf16 %v944_v63, %v944_v63 }
 0x575   : > { %1293 = vmatmul.mubr.msk.bf16.vlgmr.msra.gmra.mxu1 %vm411_vm1, %v945_v1 }
 0x635   : > { %v1006_v4 = vpop.f32.mrf.mxu1 }
 0x636   : > { %v1007_v5 = vadd.f32 %v1200_v2, %v1006_v4 }
 0x637   : > { %v1294_v6 = vpop.f32.mrf.mxu1 }
 0x638   : > { %v1012_v7 = vadd.f32 %v1007_v5, %v1838_v3 }
 0x639   : > { %v1009_v8 = vpop.f32.mrf.mxu1 }
 0x63a   : > { %v1015_v9 = vsel %vm411_vm1, %v1012_v7, 0.0 }
 0x63b   : > { %1016 = vadd.xlane.f32.xlu1 %v1015_v9  ;;  %v1295_v10 = vpop.f32.mrf.mxu1 }
 0x6c4   : > { %v1017_v11 = vpop.xlane.xlu1 %1016 }
 0x6c5   : > { %v1019_v12 = vmul.f32 0.03125, %v1017_v11 }
 0x6c7   : > { %v1020_v13 = vsub.f32 %v1012_v7, %v1019_v12 }
 0x6c9   : > { %v1021_v14 = vmul.f32 %v1020_v13, %v1020_v13 }
 0x6cb   : > { %v1022_v17 = vsel %vm411_vm1, %v1021_v14, 0.0 }
 0x6cc   : > { %1023 = vadd.xlane.f32.xlu0 %v1022_v17 }
 0x755   : > { %v1024_v18 = vpop.xlane.xlu0 %1023 }
 0x756   : > { %v1025_v20 = vmul.f32 0.03125, %v1024_v18 }
 0x758   : > { %v1026_v21 = vadd.f32 1e-12, %v1025_v20 }
 0x75a   : > { %1400 = vrsqrt.f32 %v1026_v21  ;;  %vm1029_vm6 = vcmp.eq.f32.partialorder %v1026_v21, inf  ;;  %v1032_v23 = vand.u32 2147483648, %v1026_v21  ;;  %vm1031_vm7 = vcmp.eq.f32.partialorder %v1026_v21, 0.0 }
 0x767   : > { %v1401_v22 = vpop.eup %1400 }
 0x768   : > { %v1028_v3 = vmul.f32 %v1401_v22, %v1026_v21 }
 0x76a   : > { %v1030_v24 = vsel %vm1029_vm6, %v1026_v21, %v1028_v3 }
 0x76b   : > { %v1033_v25 = vsel %vm1031_vm7, %v1032_v23, %v1030_v24 }
 0x76c   : > { %1402 = vrcp.f32 %v1033_v25 }
 0x779   : > { %v1403_v26 = vpop.eup %1402 }
 0x77a   : > { %v1035_v19 = vmul.f32 %v1403_v26, %v1020_v13 }
 0x77c   : > { %v1042_v15 = vmul.f32 %v1204_v27, %v1035_v19 }
 0x77e   : > { %v1049_v16 = vadd.f32 %v1205_v28, %v1042_v15 }
 0x780   : > { %1050 = vst.msk [vmem:[%s383_s20] sm:$0xff] %vm411_vm1, %v1049_v16 }
 0x781   : > { %1525 = shalt.err (!%p1522_p3)
}
 0x782   : > { %s1526_s21 = scalar_lea.hbm %s1063_s25, 128  ;;  %s1530_s24 = scalar_lea.hbm %s1978_s8, 256 }
 0x783   : > { %p1527_p10 = scmp.ne.s32.totalorder %s1063_s25, %s1526_s21  ;;  %p1531_p11 = scmp.lt.s32.totalorder %s1063_s25, %s1978_s8 }
 0x784   : > { %p1532_p2 = scmp.lt.s32.totalorder %s1530_s24, %s1526_s21 }
 0x785   : > { %p1528_p0 = pnand %p1527_p10, %p2006_p7 }
 0x786   : > { %p1533_p6 = por %p1532_p2, %p1531_p11 }
 0x787   : > { %p1529_p8 = pneg %p1528_p0 }
 0x789   : > { %p1534_p12 = pnand %p1533_p6, %p1529_p8 }
 0x78b   : > { %1537 = shalt.err (!%p1534_p12)
}
 0x78c   : > { %1308 = dma.vmem_to_hbm [thread:$0]  (%p2006_p7), %s1066_s4, 128, %s1063_s25, %s1052_s19  }
 0x78d PF: > { %s1077_s26 = sand.u32 1, %s1576_s27   ;;  %p2007_p9 = scmp.ne.s32.totalorder %s1989_s12, 0 }
 0x78e   : > { %p2008_p13 = scmp.ge.s32.totalorder %s1588_s30, 2  ;;  %s1078_s22 = scalar_lea.sflag [#allocation4], %s1077_s26 }
 0x790   : > { %p1325_p5 = pnand %p2008_p13, %p2007_p9 }
 0x792   : > { %p1326_p1 = pneg %p1325_p5 }
 0x794   : > { %1571 = dma.done.wait (%p1326_p1), %s1078_s22, 128  }
 0x795   : > { %1573 = vsyncadd (%p1326_p1), %s1078_s22, 4294967168  ;;  %s2009_s11 = sld [smem:[#allocation16_spill]]  ;;  %p25_p4 = scmp.ge.s32.totalorder %s1724_s10, 4  }
 0x796   : > { %s2010_s29 = sld [smem:[#allocation17_spill]]  ;;  %s2011_s27 = smov %s1580_s28 }
 0x797   : > { %s2013_s30 = smov %s1724_s10  ;;  %27 = sbr.rel (!%p25_p4) target bundleno = 12 (0xc), region = 118 }
 0x79b   : > { %s2012_s28 = smov %s2009_s11 }
 0x79c   :  { %1083 = vsyncpa [#allocation3], 1 }
 0x79d   :  { %1085 = vsyncpa [#allocation3 + $0x1], 1 }
 0x79e   :  { %1086 = vsyncpa [#allocation6], 1 }
 0x79f   :  { %1088 = vsyncpa [#allocation6 + $0x1], 1 }
 0x7a0   :  { %1089 = vsyncpa [#allocation9], 1 }
 0x7a1   :  { %1090 = vsyncpa [#allocation4], 1 }
 0x7a2   :  { %1092 = vsyncpa [#allocation4 + $0x1], 1 }

</bundles_post_ra>
